<compile_context>
chip_gen: v6e
topology: v6e:2x2x1
jax: 0.10.0
libtpu: 0.0.40
codegen_flags: <defaults>
</compile_context>

<pallas_src>
import jax
import jax.numpy as jnp
from jax.experimental import pallas as pl
from jax.experimental.pallas import tpu as pltpu


def _noise_kernel(mag_ref, x_ref, noise_ref, o_ref):
    # mag_ref: (1,) float32 in SMEM.
    # x_ref/o_ref: (Nb, Cb, Lb) VMEM tiles.  noise_ref: (Nb, 1, Lb) VMEM tile,
    # broadcast over the channel axis by the add.
    mag = mag_ref[0]
    if o_ref.dtype == jnp.float32:
        # f32 inputs: fused scale + add, all in f32 (fine on every chip).
        o_ref[...] = x_ref[...] + mag * noise_ref[...]
    else:
        # Sub-f32 inputs (e.g. bf16): do the f32 math only on the small
        # (Nb, 1, Lb) noise slab, then a native-dtype add on the big tile.
        scaled = (mag * noise_ref[...].astype(jnp.float32)).astype(o_ref.dtype)
        o_ref[...] = x_ref[...] + scaled


def _tile_budget_bytes() -> int:
    """Per-tile byte budget, tuned per TPU generation (conservatively)."""
    budget = 2 << 20  # 2 MiB: ~knee of the tile-size curve, safe under v5e's 16 MiB scoped VMEM
    try:
        kind = jax.devices()[0].device_kind.lower()
        if "v7" in kind:
            # v7x: ~3.2 TB/s HBM -> per-step overhead relatively pricier; 4 MiB
            # tiles (4x buffered x+out = 16 MiB) still fit the 32 MiB scoped default.
            budget = 4 << 20
    except Exception:
        pass
    return budget


def _sublane_multiple(dtype) -> int:
    """Sublane tile height: 8 for f32, 16 for bf16, 32 for int8/fp8."""
    return max(8, 32 // jnp.dtype(dtype).itemsize)


def _choose_tiles(N: int, C: int, L: int, dtype, budget_bytes: int):
    """Pick (Nb, Cb, Lb) so every (Nb, Cb, Lb) tile stays within budget_bytes.

    Blocks satisfy the (8, 128) divisibility rule (or equal the full dim); the
    grid uses cdiv so ragged trailing blocks are allowed (safe for elementwise).
    """
    itemsize = jnp.dtype(dtype).itemsize
    sub = _sublane_multiple(dtype)
    bytes_per_n = C * L * itemsize

    if bytes_per_n <= budget_bytes:
        # Small-shape path: full (C, L) per step; pack batch entries so each
        # grid step moves roughly `target` bytes.
        target = min(budget_bytes, 1 << 20)
        nb = max(1, min(N, target // max(bytes_per_n, 1)))
        return nb, C, L

    # Large path: Nb = 1, block channels (and lanes if needed).
    row_bytes = L * itemsize
    max_cb = budget_bytes // row_bytes
    cb = (max_cb // sub) * sub
    if cb >= sub:
        return 1, min(cb, C), L

    # Even `sub` rows of the full L exceed the budget: tile the lane axis too.
    cb = min(sub, C)  # if C < sub this is the full dim (legal)
    lb = (budget_bytes // (cb * itemsize) // 128) * 128
    lb = max(128, lb)
    lb = min(lb, L)   # full extent if L < 128 (legal, just not lane-dense)
    return 1, cb, lb


def noise_forward(x: jax.Array, noise: jax.Array, mag,
                  donate_x: bool = False) -> jax.Array:
    """x: [N, C, H, W], noise: [N, 1, H, W], mag: scalar. Returns x + mag * noise."""
    N, C, H, W = x.shape
    assert noise.shape == (N, 1, H, W)
    L = H * W

    # Lane-dense layout: flatten spatial dims into the last axis.
    x2 = x.reshape(N, C, L)
    n2 = noise.reshape(N, 1, L)

    # Keep the scalar in float32 (SMEM is a 32-bit scalar path).
    mag_arr = jnp.asarray([mag], dtype=jnp.float32)

    Nb, Cb, Lb = _choose_tiles(N, C, L, x.dtype, _tile_budget_bytes())
    grid = (pl.cdiv(N, Nb), pl.cdiv(C, Cb), pl.cdiv(L, Lb))

    out = pl.pallas_call(
        _noise_kernel,
        out_shape=jax.ShapeDtypeStruct((N, C, L), x.dtype),
        grid=grid,
        in_specs=[
            pl.BlockSpec(memory_space=pltpu.MemorySpace.SMEM),           # mag scalar
            pl.BlockSpec((Nb, Cb, Lb), lambda n, c, l: (n, c, l)),       # x tile
            pl.BlockSpec((Nb, 1, Lb), lambda n, c, l: (n, 0, l)),        # noise tile (bcast over C)
        ],
        out_specs=pl.BlockSpec((Nb, Cb, Lb), lambda n, c, l: (n, c, l)),
        compiler_params=pltpu.CompilerParams(
            dimension_semantics=("parallel", "parallel", "parallel")
        ),
        # Reuse x's HBM buffer for the output when the caller doesn't need x.
        input_output_aliases={1: 0} if donate_x else {},
    )(mag_arr, x2, n2)

    return out.reshape(N, C, H, W)


if __name__ == "__main__":
    key = jax.random.PRNGKey(0)
    kx, kn, kx2, kn2, kx3, kn3 = jax.random.split(key, 6)
    mag = 0.5  # module init is 0.0 (learnable); nonzero here to exercise the path

    # --- main demo shape (module-consistent small shape), f32 ---------------
    N, C, H, W = 2, 4, 16, 16
    x = jax.random.normal(kx, (N, C, H, W), dtype=jnp.float32)
    noise = jax.random.normal(kn, (N, 1, H, W), dtype=jnp.float32)
    out = jax.block_until_ready(noise_forward(x, noise, mag))
    ref = x + mag * noise
    assert out.shape == (N, C, H, W)
    assert jnp.allclose(out, ref, atol=1e-6, rtol=1e-6)

    # --- larger shape: exercises channel tiling + ragged trailing block -----
    N2, C2, H2, W2 = 1, 80, 128, 128
    xb = jax.random.normal(kx2, (N2, C2, H2, W2), dtype=jnp.float32)
    nb = jax.random.normal(kn2, (N2, 1, H2, W2), dtype=jnp.float32)
    out2 = jax.block_until_ready(noise_forward(xb, nb, mag))
    ref2 = xb + mag * nb
    assert jnp.allclose(out2, ref2, atol=1e-6, rtol=1e-6)

    # --- bf16 input: exercises native-dtype add path ------------------------
    xc = jax.random.normal(kx3, (N, C, H, W), dtype=jnp.bfloat16)
    nc = jax.random.normal(kn3, (N, 1, H, W), dtype=jnp.bfloat16)
    out3 = jax.block_until_ready(noise_forward(xc, nc, mag))
    ref3 = xc + (mag * nc.astype(jnp.float32)).astype(jnp.bfloat16)
    assert jnp.allclose(out3.astype(jnp.float32), ref3.astype(jnp.float32),
                        atol=1e-2, rtol=1e-2)

    print("KERNEL_OK")
</pallas_src>

<mosaic_0001>
module attributes {stable_mosaic.version = 11 : i64} {
  func.func @_noise_kernel(%arg0: i32, %arg1: i32, %arg2: i32, %arg3: memref<1xf32, #tpu.memory_space<smem>>, %arg4: memref<2x4x256xf32, #tpu.memory_space<vmem>>, %arg5: memref<2x1x256xf32, #tpu.memory_space<vmem>>, %arg6: memref<2x4x256xf32, #tpu.memory_space<vmem>>) attributes {dimension_semantics = [#tpu.dimension_semantics<parallel>, #tpu.dimension_semantics<parallel>, #tpu.dimension_semantics<parallel>], iteration_bounds = array<i64: 1, 1, 1>, scalar_prefetch = 0 : i64, scratch_operands = 0 : i64, tpu.core_type = #tpu.core_type<tc>, window_params = [{transform_indices = @transform_0, window_bounds = array<i64: 1>}, {transform_indices = @transform_1, window_bounds = array<i64: 2, 4, 256>}, {transform_indices = @transform_2, window_bounds = array<i64: 2, 1, 256>}, {transform_indices = @transform_3, window_bounds = array<i64: 2, 4, 256>}]} {
    %c0 = arith.constant 0 : index
    %0 = memref.load %arg3[%c0] : memref<1xf32, #tpu.memory_space<smem>>
    %c0_0 = arith.constant 0 : index
    %c0_1 = arith.constant 0 : index
    %c0_2 = arith.constant 0 : index
    %1 = vector.load %arg4[%c0_0, %c0_1, %c0_2] : memref<2x4x256xf32, #tpu.memory_space<vmem>>, vector<2x4x256xf32>
    %c0_3 = arith.constant 0 : index
    %c0_4 = arith.constant 0 : index
    %c0_5 = arith.constant 0 : index
    %2 = vector.load %arg5[%c0_3, %c0_4, %c0_5] : memref<2x1x256xf32, #tpu.memory_space<vmem>>, vector<2x1x256xf32>
    %3 = vector.broadcast %0 : f32 to vector<2x1x256xf32>
    %4 = arith.mulf %3, %2 : vector<2x1x256xf32>
    %5 = vector.broadcast %4 : vector<2x1x256xf32> to vector<2x4x256xf32>
    %6 = arith.addf %1, %5 : vector<2x4x256xf32>
    %c0_6 = arith.constant 0 : index
    %c0_7 = arith.constant 0 : index
    %c0_8 = arith.constant 0 : index
    %7 = vector.load %arg6[%c0_6, %c0_7, %c0_8] : memref<2x4x256xf32, #tpu.memory_space<vmem>>, vector<2x4x256xf32>
    tpu.vector_store %arg6[%c0_6, %c0_7, %c0_8], %6 {strides = array<i32>} : memref<2x4x256xf32, #tpu.memory_space<vmem>>, vector<2x4x256xf32>,
    return
  }
  func.func @transform_0(%arg0: i32, %arg1: i32, %arg2: i32) -> i32 {
    %c0_i32 = arith.constant 0 : i32
    %c0_i32_0 = arith.constant 0 : i32
    return %c0_i32 : i32
  }
  func.func @transform_1(%arg0: i32, %arg1: i32, %arg2: i32) -> (i32, i32, i32) {
    %c0_i32 = arith.constant 0 : i32
    return %arg0, %arg1, %arg2 : i32, i32, i32
  }
  func.func @transform_2(%arg0: i32, %arg1: i32, %arg2: i32) -> (i32, i32, i32) {
    %c0_i32 = arith.constant 0 : i32
    %c0_i32_0 = arith.constant 0 : i32
    return %arg0, %c0_i32, %arg2 : i32, i32, i32
  }
  func.func @transform_3(%arg0: i32, %arg1: i32, %arg2: i32) -> (i32, i32, i32) {
    %c0_i32 = arith.constant 0 : i32
    return %arg0, %arg1, %arg2 : i32, i32, i32
  }
}

</mosaic_0001>

<bundles_post_ra>
// kernel: tpu_custom_call.1
= control target key start
LH: loop header
LB: loop body
LE: loop exit
PB: predicated region body
PF: predicated region fallthrough
CT: control target
= control target key end

     0   :  { %9 = vsyncpa [#allocation4], 0  ;;  %s214_s0 = inlined_call_operand.<no memory space> [shape: f32[1], index: 0, kind: input, shape index: {}]   ;;  %s215_s1 = inlined_call_operand.hbm [shape: f32[2,4,256], index: 1, kind: input, shape index: {}]   ;;  %s216_s2 = inlined_call_operand.hbm [shape: f32[2,1,256], index: 2, kind: input, shape index: {}]   ;;  %s217_s3 = inlined_call_operand.hbm [shape: f32[2,4,256], index: 3, kind: output, shape index: {}]  }
   0x1   :  { %10 = vsyncpa [#allocation7], 0 }
   0x2   :  { %11 = vsyncpa [#allocation5], 0  ;;  %s169_s12 = smov [#allocation3]  }
   0x3   :  { %s19_s13 = sshll.u32 %s169_s12, 4  ;;  %s20_s13 = int_to_ptr.vmem [resolvable:$true] %s19_s13 }
   0x4   :  { %s111_s14 = scalar_lea.vmem %s20_s13, 256  ;;  %p116_p1 = scmp.lt.s32.totalorder %s20_s13, %s20_s13 }
   0x5   :  { %p112_p0 = scmp.ne.s32.totalorder %s20_s13, %s111_s14  ;;  %p117_p2 = scmp.lt.s32.totalorder %s111_s14, %s111_s14 }
   0x7   :  { %p118_p3 = por %p117_p2, %p116_p1 }
   0x9   :  { %p119_p4 = pnand %p118_p3, %p112_p0 }
   0xb   :  { %122 = shalt.err (!%p119_p4)
}
   0xc   :  { %s170_s15 = smov 128   ;;  %s171_s16 = smov 8  }
   0xd   :  { %25 = dma.hbm_to_vmem [thread:$0]  %s215_s1, 256, %s20_s13, [#allocation4], %s170_s15, %s170_s15, %s171_s16  }
   0xe   :  { %s172_s19 = smov [#allocation6]  }
   0xf   :  { %s31_s20 = sshll.u32 %s172_s19, 4  ;;  %s32_s20 = int_to_ptr.vmem [resolvable:$true] %s31_s20 }
  0x10   :  { %s131_s21 = scalar_lea.vmem %s32_s20, 64  ;;  %p136_p6 = scmp.lt.s32.totalorder %s32_s20, %s32_s20 }
  0x11   :  { %p132_p5 = scmp.ne.s32.totalorder %s32_s20, %s131_s21  ;;  %p137_p7 = scmp.lt.s32.totalorder %s131_s21, %s131_s21 }
  0x13   :  { %p138_p8 = por %p137_p7, %p136_p6 }
  0x15   :  { %p139_p9 = pnand %p138_p8, %p132_p5 }
  0x17   :  { %142 = shalt.err (!%p139_p9)
}
  0x18   :  { %s173_s22 = smov 32   ;;  %s174_s23 = smov 2  }
  0x19   :  { %37 = dma.hbm_to_vmem [thread:$0]  %s216_s2, 64, %s32_s20, [#allocation7], %s173_s22, %s173_s22, %s174_s23  }
  0x1a   :  { %163 = dma.done.wait [#allocation4], 256  }
  0x1b   :  { %164 = vsyncadd [#allocation4], 4294967040 }
  0x1c   :  { %165 = dma.done.wait [#allocation7], 64  }
  0x1d   :  { %166 = vsyncadd [#allocation7], 4294967232  ;;  %v54_v0 = vlaneseq  ;;  %v49_v2 = vstv %s214_s0  ;;  %v47_v5 = vld [vmem:[#allocation6] sm:$0x3]  ;;  %v48_v7 = vld [vmem:[#allocation6 + $0x2] sm:$0x3] }
  0x1e   :  { %v50_v6 = vmul.f32 %v49_v2, %v47_v5  ;;  %v51_v8 = vmul.f32 %v49_v2, %v48_v7  ;;  %v45_v11 = vld [vmem:[#allocation3] sm:$0xff]  ;;  %v46_v15 = vld [vmem:[#allocation3 + $0x8] sm:$0xff]  ;;  %s175_s2 = smov [#allocation8]  }
  0x1f   :  { %v55_v1 = vshrl.u32 %v54_v0, 7  ;;  %s83_s27 = sshll.u32 %s175_s2, 4  ;;  %s84_s27 = int_to_ptr.vmem [resolvable:$true] %s83_s27 }
  0x20   :  { %s143_s0 = scalar_lea.vmem %s84_s27, 256  ;;  %p148_p11 = scmp.lt.s32.totalorder %s84_s27, %s84_s27 }
  0x21   :  { %v56_v3 = vsub.s32 0, %v55_v1  ;;  %v60_v4 = vsub.s32 1, %v55_v1  ;;  %p144_p10 = scmp.ne.s32.totalorder %s84_s27, %s143_s0  ;;  %p149_p12 = scmp.lt.s32.totalorder %s143_s0, %s143_s0 }
  0x23   :  { %v57_v9 = vrot.slane %v50_v6, %v56_v3  ;;  %v61_v10 = vrot.slane %v50_v6, %v60_v4  ;;  %v65_v12 = vrot.slane %v51_v8, %v56_v3  ;;  %v69_v13 = vrot.slane %v51_v8, %v60_v4  ;;  %p150_p13 = por %p149_p12, %p148_p11 }
  0x25   :  { %v70_v14 = vcombine.low %v57_v9, %v61_v10  ;;  %v71_v16 = vcombine.low %v65_v12, %v69_v13  ;;  %p151_p0 = pnand %p150_p13, %p144_p10 }
  0x27   :  { %v74_v17 = vadd.f32 %v70_v14, %v45_v11  ;;  %v75_v18 = vadd.f32 %v71_v16, %v46_v15 }
  0x29   :  { %76 = vst [vmem:[#allocation8] sm:$0xff] %v74_v17  ;;  %77 = vst [vmem:[#allocation8 + $0x8] sm:$0xff] %v75_v18 }
  0x2a   :  { %154 = shalt.err (!%p151_p0)
}
  0x2b   :  { %89 = dma.vmem_to_hbm [thread:$0]  %s84_s27, 256, %s217_s3, [#allocation5], %s170_s15, %s170_s15, %s171_s16  }
  0x2c   :  { %167 = dma.done.wait [#allocation5], 256  }
  0x2d   :  { %168 = vsyncadd [#allocation5], 4294967040 }
  0x2e   :  { %93 = vsyncpa [#allocation4], 1 }
  0x2f   :  { %94 = vsyncpa [#allocation7], 1 }
  0x30   :  { %95 = vsyncpa [#allocation5], 1 }

</bundles_post_ra>
